<compile_context>
chip_gen: v7x
topology: tpu7x:2x2x1
jax: 0.10.0
libtpu: 0.0.40
codegen_flags: <defaults>
</compile_context>

<pallas_src>
import functools
import math

import numpy as np

import jax
import jax.numpy as jnp
from jax.experimental import pallas as pl
from jax.experimental.pallas import tpu as pltpu


# ---------------------------------------------------------------------------
# Small helpers
# ---------------------------------------------------------------------------

def _round_up(x, m):
    return ((x + m - 1) // m) * m


def _padded_nodes(n):
    # Lane-aligned padding; for big graphs pad further so 512/1024 tiles divide.
    if n <= 1024:
        return _round_up(max(n, 1), 128)
    return _round_up(n, 512)


def _pick_row_tile(n_pad):
    # Largest tile that divides n_pad and still leaves >=2 row blocks
    # (keeps both v7x TensorCores busy on the "parallel" axis).
    for t in (512, 256, 128, 64, 32, 16, 8):
        if n_pad % t == 0 and n_pad // t >= 2:
            return t
    return n_pad


def _pick_col_tile(n_pad):
    for t in (2048, 1024, 512, 256, 128, 64, 32, 16, 8):
        if n_pad % t == 0:
            return t
    return n_pad


def _tpu_vmem_capacity():
    try:
        cap = int(pltpu.get_tpu_info().vmem_capacity_bytes)
        if cap > 0:
            return cap
    except Exception:
        pass
    return 64 * 1024 * 1024  # conservative default (v7x per-core VMEM)


def _fused_vmem_bytes(n_pad, d, nlayers):
    # Conservative: assume every BlockSpec'd operand is double-buffered.
    del nlayers
    return (4 * n_pad * n_pad        # A_hat bf16
            + 4 * n_pad * d          # h0 / initial h bf16
            + 4 * n_pad * d          # output bf16
            + 4 * d * d              # per-layer W bf16
            + 4 * n_pad * d)         # f32 h scratch carried across layers


# ---------------------------------------------------------------------------
# Pallas kernels
# ---------------------------------------------------------------------------

def _linear_kernel(x_ref, w_ref, b_ref, o_ref, *, relu):
    # o = x @ w + b (optionally ReLU), f32 accumulate on the MXU.
    y = jnp.dot(x_ref[...], w_ref[...], preferred_element_type=jnp.float32)
    y = y + b_ref[...].astype(jnp.float32)
    if relu:
        y = jnp.maximum(y, 0.0)
    o_ref[...] = y.astype(o_ref.dtype)


def _gcnii_stack_kernel(theta_ref, a_ref, h0_ref, w_ref, o_ref, h_scratch,
                        *, alpha):
    # One grid step == one GCNII layer; A_hat and h0 are VMEM-resident,
    # h is carried across layers in an f32 VMEM scratch.
    l = pl.program_id(0)

    @pl.when(l == 0)
    def _():
        h_scratch[...] = h0_ref[...].astype(h_scratch.dtype)

    h = h_scratch[...].astype(jnp.bfloat16)                      # (n_pad, d)
    hi = jnp.dot(a_ref[...], h, preferred_element_type=jnp.float32)
    h0 = h0_ref[...].astype(jnp.float32)
    support = (1.0 - alpha) * hi + alpha * h0                    # initial residual
    theta = theta_ref[l]                                         # SMEM scalar
    sw = jnp.dot(support.astype(jnp.bfloat16), w_ref[0],
                 preferred_element_type=jnp.float32)
    out = jnp.maximum(theta * sw + (1.0 - theta) * support, 0.0)
    h_scratch[...] = out.astype(h_scratch.dtype)

    @pl.when(l == pl.num_programs(0) - 1)
    def _():
        o_ref[...] = out.astype(o_ref.dtype)


def _gcnii_layer_kernel(a_ref, h_ref, h0_ref, w_ref, o_ref, acc_ref,
                        *, theta, alpha, tk, h_resident):
    # Tiled over (row-block i, reduction-block k):
    #   hi      = A_hat @ h                      (f32 accumulator over k)
    #   support = (1-alpha)*hi + alpha*h0
    #   out     = relu(theta*(support @ W) + (1-theta)*support)
    k = pl.program_id(1)

    @pl.when(k == 0)
    def _():
        acc_ref[...] = jnp.zeros_like(acc_ref)

    if h_resident:
        start = pl.multiple_of(k * tk, tk)
        h_blk = h_ref[pl.ds(start, tk), :]       # h fully resident in VMEM
    else:
        h_blk = h_ref[...]                       # h streamed per k block
    acc_ref[...] += jnp.dot(a_ref[...], h_blk,
                            preferred_element_type=jnp.float32)

    @pl.when(k == pl.num_programs(1) - 1)
    def _():
        hi = acc_ref[...]
        support = (1.0 - alpha) * hi + alpha * h0_ref[...].astype(jnp.float32)
        sw = jnp.dot(support.astype(w_ref.dtype), w_ref[...],
                     preferred_element_type=jnp.float32)
        out = theta * sw + (1.0 - theta) * support
        o_ref[...] = jnp.maximum(out, 0.0).astype(o_ref.dtype)


# ---------------------------------------------------------------------------
# pallas_call wrappers
# ---------------------------------------------------------------------------

def linear(x, w, b, *, relu=False, out_dtype=jnp.float32):
    n, f = x.shape
    h = w.shape[1]
    tm = _pick_row_tile(n)
    kernel = functools.partial(_linear_kernel, relu=relu)
    out_bytes = 2 if out_dtype == jnp.bfloat16 else 4
    return pl.pallas_call(
        kernel,
        out_shape=jax.ShapeDtypeStruct((n, h), out_dtype),
        grid_spec=pltpu.PrefetchScalarGridSpec(
            num_scalar_prefetch=0,
            grid=(n // tm,),
            in_specs=[pl.BlockSpec((tm, f), lambda i: (i, 0)),
                      pl.BlockSpec((f, h), lambda i: (0, 0)),
                      pl.BlockSpec((1, h), lambda i: (0, 0))],
            out_specs=pl.BlockSpec((tm, h), lambda i: (i, 0))),
        compiler_params=pltpu.CompilerParams(
            dimension_semantics=("parallel",)),
        cost_estimate=pl.CostEstimate(
            flops=2 * n * f * h, transcendentals=0,
            bytes_accessed=(x.dtype.itemsize * n * f + 4 * (f * h + h)
                            + out_bytes * n * h)),
    )(x, w, b)


def gcnii_stack_fused(a_pad, h, w_stack, thetas, *, alpha, vmem_limit):
    # Whole conv stack in one pallas_call: A_hat / h0 resident, W streamed per
    # layer, theta via scalar prefetch, h carried in f32 VMEM scratch.
    n_pad, d = h.shape
    nlayers = w_stack.shape[0]
    kernel = functools.partial(_gcnii_stack_kernel, alpha=float(alpha))
    return pl.pallas_call(
        kernel,
        out_shape=jax.ShapeDtypeStruct((n_pad, d), jnp.bfloat16),
        grid_spec=pltpu.PrefetchScalarGridSpec(
            num_scalar_prefetch=1,
            grid=(nlayers,),
            in_specs=[pl.BlockSpec((n_pad, n_pad), lambda l, th: (0, 0)),  # A_hat
                      pl.BlockSpec((n_pad, d), lambda l, th: (0, 0)),      # h0
                      pl.BlockSpec((1, d, d), lambda l, th: (l, 0, 0))],   # W_l
            out_specs=pl.BlockSpec((n_pad, d), lambda l, th: (0, 0)),
            scratch_shapes=[pltpu.VMEM((n_pad, d), jnp.float32)]),
        compiler_params=pltpu.CompilerParams(
            dimension_semantics=("arbitrary",),
            vmem_limit_bytes=int(vmem_limit)),
        cost_estimate=pl.CostEstimate(
            flops=2 * nlayers * (n_pad * n_pad * d + n_pad * d * d),
            transcendentals=0,
            bytes_accessed=2 * (n_pad * n_pad + 2 * n_pad * d
                                + nlayers * d * d)),
    )(thetas, a_pad, h, w_stack)


def gcnii_layer(a_pad, h, h0, w, *, theta, alpha, vmem_limit, vmem_budget):
    # Per-layer tiled fallback for graphs whose A_hat does not fit VMEM.
    n_pad = a_pad.shape[0]
    d = h.shape[1]
    tm = _pick_row_tile(n_pad)
    tk = _pick_col_tile(n_pad)
    h_resident = (4 * n_pad * d) <= vmem_budget // 4

    def est(tm_, tk_):
        return (4 * tm_ * tk_
                + (4 * n_pad * d if h_resident else 4 * tk_ * d)
                + 4 * tm_ * d + 4 * d * d + 4 * tm_ * d
                + 4 * tm_ * d)
    while est(tm, tk) > vmem_budget and tk > 128:
        tk //= 2
    while est(tm, tk) > vmem_budget and tm > 8:
        tm //= 2

    grid = (n_pad // tm, n_pad // tk)
    kernel = functools.partial(_gcnii_layer_kernel, theta=float(theta),
                               alpha=float(alpha), tk=tk,
                               h_resident=h_resident)
    if h_resident:
        h_spec = pl.BlockSpec((n_pad, d), lambda i, k: (0, 0))
        h_bytes = n_pad * d
    else:
        h_spec = pl.BlockSpec((tk, d), lambda i, k: (k, 0))
        h_bytes = grid[0] * n_pad * d           # h re-streamed per row block
    return pl.pallas_call(
        kernel,
        out_shape=jax.ShapeDtypeStruct((n_pad, d), jnp.bfloat16),
        grid_spec=pltpu.PrefetchScalarGridSpec(
            num_scalar_prefetch=0,
            grid=grid,
            in_specs=[pl.BlockSpec((tm, tk), lambda i, k: (i, k)),   # A_hat
                      h_spec,                                        # h
                      pl.BlockSpec((tm, d), lambda i, k: (i, 0)),    # h0
                      pl.BlockSpec((d, d), lambda i, k: (0, 0))],    # W
            out_specs=pl.BlockSpec((tm, d), lambda i, k: (i, 0)),
            scratch_shapes=[pltpu.VMEM((tm, d), jnp.float32)]),
        compiler_params=pltpu.CompilerParams(
            dimension_semantics=("parallel", "arbitrary"),
            vmem_limit_bytes=int(vmem_limit)),
        cost_estimate=pl.CostEstimate(
            flops=2 * (n_pad * n_pad * d + n_pad * d * d),
            transcendentals=0,
            bytes_accessed=2 * (n_pad * n_pad + h_bytes + 2 * n_pad * d
                                + d * d)),
    )(a_pad, h, h0, w)


# ---------------------------------------------------------------------------
# GCNII forward (glue in plain JAX, compute in Pallas kernels)
# ---------------------------------------------------------------------------

def gcnii_forward(a_hat, x, params, *, lamda, alpha, force_per_layer=False):
    n = x.shape[0]
    d = params["fc0_w"].shape[1]          # lane-padded hidden width
    nclass = params["nclass"]
    nlayers = len(params["conv_ws"])

    cap = _tpu_vmem_capacity()
    vmem_budget = int(cap * 0.70)
    vmem_limit = min(int(cap * 0.85), cap - (4 << 20))

    n_pad_fused = _round_up(max(n, 1), 128)
    use_fused = ((not force_per_layer) and nlayers > 0
                 and _fused_vmem_bytes(n_pad_fused, d, nlayers) <= vmem_budget)
    n_pad = n_pad_fused if use_fused else _padded_nodes(n)

    x_pad = jnp.pad(x.astype(jnp.float32), ((0, n_pad - n), (0, 0)))
    a_pad = jnp.pad(a_hat, ((0, n_pad - n), (0, n_pad - n))).astype(jnp.bfloat16)

    # fcs[0] + ReLU (dropout is a no-op in eval mode)
    h = linear(x_pad, params["fc0_w"], params["fc0_b"],
               relu=True, out_dtype=jnp.bfloat16)

    if nlayers > 0:
        if use_fused:
            thetas = jnp.asarray([math.log(lamda / (i + 1) + 1.0)
                                  for i in range(nlayers)], jnp.float32)
            w_stack = jnp.stack(params["conv_ws"])          # (L, d, d) bf16
            h = gcnii_stack_fused(a_pad, h, w_stack, thetas,
                                  alpha=alpha, vmem_limit=vmem_limit)
        else:
            h0 = h
            for i, w_conv in enumerate(params["conv_ws"]):
                theta = math.log(lamda / (i + 1) + 1.0)
                h = gcnii_layer(a_pad, h, h0, w_conv, theta=theta, alpha=alpha,
                                vmem_limit=vmem_limit, vmem_budget=vmem_budget)

    # fcs[-1] (bf16 activations straight into the kernel — no wrapper cast)
    out = linear(h, params["fc1_w"], params["fc1_b"],
                 relu=False, out_dtype=jnp.float32)
    return out[:n, :nclass]


# ---------------------------------------------------------------------------
# Pure-JAX f32 reference (same padded weights)
# ---------------------------------------------------------------------------

def gcnii_reference(a_hat, x, params, *, lamda, alpha):
    h = jnp.maximum(x @ params["fc0_w"] + params["fc0_b"], 0.0)
    h0 = h
    for i, w in enumerate(params["conv_ws"]):
        theta = math.log(lamda / (i + 1) + 1.0)
        hi = a_hat @ h
        support = (1.0 - alpha) * hi + alpha * h0
        out = theta * (support @ w.astype(jnp.float32)) + (1.0 - theta) * support
        h = jnp.maximum(out, 0.0)
    out = h @ params["fc1_w"] + params["fc1_b"]
    return out[:, :params["nclass"]]


# ---------------------------------------------------------------------------
# Deterministic parameter / input construction (PyTorch-equivalent inits,
# zero-padded to lane-dense widths)
# ---------------------------------------------------------------------------

def _pad_to(a, rows, cols):
    return jnp.pad(a, ((0, rows - a.shape[0]), (0, cols - a.shape[1])))


def init_params(key, nfeat, nlayers, nhidden, nclass, lane=128):
    h_pad = _round_up(max(nhidden, 1), lane)
    c_pad = _round_up(max(nclass, 1), lane)
    ks = jax.random.split(key, 4 + nlayers)
    # nn.Linear default init: U(-1/sqrt(fan_in), 1/sqrt(fan_in))
    b0 = 1.0 / math.sqrt(nfeat)
    fc0_w = jax.random.uniform(ks[0], (nfeat, nhidden), jnp.float32, -b0, b0)
    fc0_b = jax.random.uniform(ks[1], (1, nhidden), jnp.float32, -b0, b0)
    b1 = 1.0 / math.sqrt(nhidden)
    fc1_w = jax.random.uniform(ks[2], (nhidden, nclass), jnp.float32, -b1, b1)
    fc1_b = jax.random.uniform(ks[3], (1, nclass), jnp.float32, -b1, b1)
    # GraphConvolution weights: U(-stdv, stdv), stdv = 1/sqrt(out_features)
    stdv = 1.0 / math.sqrt(nhidden)
    conv_ws = [
        jax.random.uniform(ks[4 + i], (nhidden, nhidden), jnp.float32, -stdv, stdv)
        for i in range(nlayers)
    ]
    # Zero-pad to lane-dense widths: padded columns of W / b are zero, so the
    # padded features stay exactly zero through the ReLU/residual chain.
    return {
        "fc0_w": _pad_to(fc0_w, nfeat, h_pad),
        "fc0_b": _pad_to(fc0_b, 1, h_pad),
        "fc1_w": _pad_to(fc1_w, h_pad, c_pad),
        "fc1_b": _pad_to(fc1_b, 1, c_pad),
        "conv_ws": [_pad_to(w, h_pad, h_pad).astype(jnp.bfloat16)
                    for w in conv_ws],
        "nclass": nclass,
    }


def make_normalized_adjacency(key, n, p=0.15):
    # Random symmetric graph, then A_hat = D^{-1/2} A D^{-1/2}
    # (equivalent to dgl.GraphConv(norm="both") message passing).
    m = jax.random.uniform(key, (n, n)) < p
    a = jnp.logical_or(m, m.T).astype(jnp.float32)
    a = a * (1.0 - jnp.eye(n))          # no self loops
    a = a + jnp.eye(n)                  # add self loops so degrees > 0
    deg = jnp.sum(a, axis=1)
    d_inv_sqrt = 1.0 / jnp.sqrt(deg)
    return (d_inv_sqrt[:, None] * a) * d_inv_sqrt[None, :]


if __name__ == "__main__":
    # N deliberately not a multiple of 128 to exercise the padding path.
    N, NFEAT, NHIDDEN, NCLASS, NLAYERS = 200, 16, 32, 7, 4
    LAMDA, ALPHA = 0.5, 0.1

    key = jax.random.PRNGKey(0)
    k_adj, k_x, k_p = jax.random.split(key, 3)

    a_hat = make_normalized_adjacency(k_adj, N)
    x = jax.random.normal(k_x, (N, NFEAT), jnp.float32)
    params = init_params(k_p, NFEAT, NLAYERS, NHIDDEN, NCLASS)

    # Fused (A_hat VMEM-resident) path and tiled per-layer fallback path.
    out_fused = gcnii_forward(a_hat, x, params, lamda=LAMDA, alpha=ALPHA)
    out_layered = gcnii_forward(a_hat, x, params, lamda=LAMDA, alpha=ALPHA,
                                force_per_layer=True)
    jax.block_until_ready((out_fused, out_layered))

    assert out_fused.shape == (N, NCLASS), out_fused.shape
    assert out_layered.shape == (N, NCLASS), out_layered.shape
    assert bool(jnp.all(jnp.isfinite(out_fused)))
    assert bool(jnp.all(jnp.isfinite(out_layered)))

    ref = gcnii_reference(a_hat, x, params, lamda=LAMDA, alpha=ALPHA)
    np.testing.assert_allclose(np.asarray(out_fused), np.asarray(ref),
                               rtol=5e-2, atol=5e-2)
    np.testing.assert_allclose(np.asarray(out_layered), np.asarray(ref),
                               rtol=5e-2, atol=5e-2)
    np.testing.assert_allclose(np.asarray(out_fused), np.asarray(out_layered),
                               rtol=5e-2, atol=5e-2)
    print("KERNEL_OK")
</pallas_src>

<mosaic_0001>
module attributes {stable_mosaic.version = 11 : i64} {
  func.func @_linear_kernel(%arg0: i32, %arg1: memref<128x16xf32, #tpu.memory_space<vmem>>, %arg2: memref<16x128xf32, #tpu.memory_space<vmem>>, %arg3: memref<1x128xf32, #tpu.memory_space<vmem>>, %arg4: memref<128x128xbf16, #tpu.memory_space<vmem>>) attributes {dimension_semantics = [#tpu.dimension_semantics<parallel>], iteration_bounds = array<i64: 2>, scalar_prefetch = 0 : i64, scratch_operands = 0 : i64, tpu.core_type = #tpu.core_type<tc>, window_params = [{transform_indices = @transform_0, window_bounds = array<i64: 128, 16>}, {pipeline_mode = #tpu.pipeline_mode<synchronous>, transform_indices = @transform_1, window_bounds = array<i64: 16, 128>}, {pipeline_mode = #tpu.pipeline_mode<synchronous>, transform_indices = @transform_2, window_bounds = array<i64: 1, 128>}, {transform_indices = @transform_3, window_bounds = array<i64: 128, 128>}]} {
    %c0 = arith.constant 0 : index
    %c0_0 = arith.constant 0 : index
    %0 = vector.load %arg1[%c0, %c0_0] : memref<128x16xf32, #tpu.memory_space<vmem>>, vector<128x16xf32>
    %c0_1 = arith.constant 0 : index
    %c0_2 = arith.constant 0 : index
    %1 = vector.load %arg2[%c0_1, %c0_2] : memref<16x128xf32, #tpu.memory_space<vmem>>, vector<16x128xf32>
    %cst = arith.constant dense<0.000000e+00> : vector<128x128xf32>
    %2 = tpu.matmul %0, %1, %cst {dimension_numbers = #tpu.dot_dimension_numbers<[1], [0], [0], [1], [0, 0, 1, 1], [], []>} : vector<128x16xf32>, vector<16x128xf32>, vector<128x128xf32> -> vector<128x128xf32>
    %c0_3 = arith.constant 0 : index
    %c0_4 = arith.constant 0 : index
    %3 = vector.load %arg3[%c0_3, %c0_4] : memref<1x128xf32, #tpu.memory_space<vmem>>, vector<1x128xf32>
    %4 = vector.broadcast %3 : vector<1x128xf32> to vector<128x128xf32>
    %5 = arith.addf %2, %4 : vector<128x128xf32>
    %cst_5 = arith.constant 0.000000e+00 : f32
    %6 = vector.broadcast %cst_5 : f32 to vector<128x128xf32>
    %7 = arith.maximumf %5, %6 : vector<128x128xf32>
    %8 = arith.truncf %7 : vector<128x128xf32> to vector<128x128xbf16>
    %c0_6 = arith.constant 0 : index
    %c0_7 = arith.constant 0 : index
    %9 = vector.load %arg4[%c0_6, %c0_7] : memref<128x128xbf16, #tpu.memory_space<vmem>>, vector<128x128xbf16>
    tpu.vector_store %arg4[%c0_6, %c0_7], %8 {strides = array<i32>} : memref<128x128xbf16, #tpu.memory_space<vmem>>, vector<128x128xbf16>,
    return
  }
  func.func @transform_0(%arg0: i32) -> (i32, i32) {
    %c0_i32 = arith.constant 0 : i32
    %c0_i32_0 = arith.constant 0 : i32
    return %arg0, %c0_i32 : i32, i32
  }
  func.func @transform_1(%arg0: i32) -> (i32, i32) {
    %c0_i32 = arith.constant 0 : i32
    %c0_i32_0 = arith.constant 0 : i32
    %c0_i32_1 = arith.constant 0 : i32
    return %c0_i32, %c0_i32_0 : i32, i32
  }
  func.func @transform_2(%arg0: i32) -> (i32, i32) {
    %c0_i32 = arith.constant 0 : i32
    %c0_i32_0 = arith.constant 0 : i32
    %c0_i32_1 = arith.constant 0 : i32
    return %c0_i32, %c0_i32_0 : i32, i32
  }
  func.func @transform_3(%arg0: i32) -> (i32, i32) {
    %c0_i32 = arith.constant 0 : i32
    %c0_i32_0 = arith.constant 0 : i32
    return %arg0, %c0_i32 : i32, i32
  }
}

</mosaic_0001>

<bundles_post_ra>
// kernel: tpu_custom_call.1
= control target key start
LH: loop header
LB: loop body
LE: loop exit
PB: predicated region body
PF: predicated region fallthrough
CT: control target
= control target key end

     0   :  { %8 = vsyncpa [#allocation3], 0  ;;  %s994_s0 = inlined_call_operand.vmem [shape: f32[256,16], index: 0, kind: input, shape index: {}]   ;;  %s995_s1 = inlined_call_operand.vmem [shape: f32[16,128], index: 1, kind: input, shape index: {}]   ;;  %s996_s2 = inlined_call_operand.vmem [shape: f32[1,128], index: 2, kind: input, shape index: {}]   ;;  %s997_s3 = inlined_call_operand.hbm [shape: bf16[256,128], index: 3, kind: output, shape index: {}]  }
   0x1   :  { %10 = vsyncpa [#allocation3 + $0x1], 0  ;;  %s852_s12 = smov 0   ;;  %s854_s13 = smov 0  }
   0x2   :  { %s856_s14 = smov 0   ;;  %s858_s15 = smov 0  }
   0x3 LB: > { %s873_s16 = sadd.s32 4294967295, %s827_s15   ;;  %s563_s17 = sadd.s32 4294967294, %s827_s15   ;;  %s827_s15 = sphi %s858_s15, %s1003_s15   ;;  %s823_s14 = sphi %s856_s14, %s1002_s14   ;;  %s819_s13 = sphi %s854_s13, %s1001_s13   ;;  %s815_s12 = sphi %s852_s12, %s1000_s12  }
   0x4   : > { %s877_s18 = sadd.s32 1, %s827_s15   ;;  %s91_s19 = sadd.s32 1, %s823_s14 }
   0x5   : > { %s88_s20 = ssub.s32 %s827_s15, %s877_s18  ;;  %p101_p0 = scmp.ne.s32.totalorder %s823_s14, %s819_s13 }
   0x6   : > { %p89_p1 = scmp.eq.s32.totalorder %s88_s20, 0  ;;  %p102_p2 = scmp.eq.s32.totalorder %s873_s16, 1 }
   0x7   : > { %p107_p3 = scmp.ne.s32.totalorder %s819_s13, %s815_s12  ;;  %p108_p4 = scmp.eq.s32.totalorder %s563_s17, 1 }
   0x8   : > { %s888_s21 = scalar_select %p89_p1, %s823_s14, %s91_s19  }
   0x9   : > { %p890_p5 = por %p102_p2, %p101_p0  ;;  %p894_p6 = por %p108_p4, %p107_p3 }
   0xa   : > { %p566_p7 = scmp.ge.s32.totalorder %s827_s15, 1  ;;  %p141_p8 = scmp.lt.s32.totalorder %s827_s15, 3 }
   0xc   : > { %p142_p9 = pnand %p566_p7, %p141_p8 }
   0xd   : > { %v188_v0 = vld [vmem:[%s995_s1] sm:$0xff] (!%p142_p9)  ;;  %v189_v1 = vld [vmem:[%s995_s1 + $0x8] sm:$0xff] (!%p142_p9)  ;;  %s568_s28 = sshll.u32 (!%p142_p9), %s873_s16, 4  ;;  %vm197_vm0 = vcmask (!%p142_p9), 130048   ;;  %s162_s8 = sand.u32 (!%p142_p9), 1, %s819_s13  }
   0xe   : > { %145 = sbr.rel (%p142_p9) target bundleno = 273 (0x111), region = 32  ;;  %v718_v2 = vpack.c.bf16 (!%p142_p9), %v189_v1, %v188_v0  ;;  %p166_p10 = scmp.lt.s32.totalorder (!%p142_p9), %s568_s28, 31  ;;  %v570_v19 = vld [vmem:[%s996_s2] ss:$0 sm:$0xff] (!%p142_p9) }
   0xf   : > { %s567_s9 = sshll.u32 (!%p142_p9), %s162_s8, 6  ;;  %s624_s11 = sshll.u32 (!%p142_p9), %s873_s16, 10 }
  0x10   : > { %719 = vmatprep.subr.bf16.mxu0 (!%p142_p9), %v718_v2  ;;  %722 = vmatprep.subr.bf16.mxu1 (!%p142_p9), %v718_v2  ;;  %s932_s10 = scalar_lea.vmem (!%p142_p9), [#allocation2], %s567_s9  ;;  %s945_s24 = scalar_lea.hbm (!%p142_p9), %s997_s3, %s624_s11 }
  0x11   : > { %721 = vmatpush3.bf16.msra.mxu0 (!%p142_p9), %v718_v2  ;;  %723 = vmatpush3.bf16.msra.mxu1 (!%p142_p9), %v718_v2  ;;  %s501_s17 = sshll.u32 (!%p142_p9), %s932_s10, 4  ;;  %s953_s16 = scalar_lea.sflag (!%p142_p9), [#allocation3], %s162_s8  ;;  %s947_s17 = int_to_ptr.vmem [resolvable:$true] %s501_s17 }
  0x12   : > { %s765_s25 = scalar_lea.vmem (!%p142_p9), %s947_s17, 1024  ;;  %s829_s26 = smov (!%p142_p9), [#allocation2]  }
  0x13   : > { %p766_p11 = scmp.ne.s32.totalorder (!%p142_p9), %s947_s17, %s765_s25  ;;  %s769_s27 = sshll.u32 (!%p142_p9), %s829_s26, 4  ;;  %s770_s27 = int_to_ptr.vmem [resolvable:$false] %s769_s27 }
  0x14   : > { %p772_p0 = scmp.lt.s32.totalorder (!%p142_p9), %s947_s17, %s770_s27 }
  0x15   : > { %s1005_s28 = smov (!%p166_p10, %s568_s28), 31  ;;  %p767_p12 = pnand %p766_p11, %p890_p5 }
  0x16   : > { %s569_s29 = sshll.u32 %s1005_s28, 3  ;;  %s771_s28 = scalar_lea.vmem %s770_s27, 2048 }
  0x17   : > { %s169_s5 = scalar_lea.vmem %s994_s0, %s569_s29  ;;  %p768_p13 = pneg %p767_p12 }
  0x18   : > { %v172_v3 = vld [vmem:[%s169_s5] sm:$0xff]  ;;  %v173_v5 = vld [vmem:[%s169_s5 + $0x8] sm:$0xff]  ;;  %v174_v7 = vld [vmem:[%s169_s5 + $0x10] sm:$0xff]  ;;  %p773_p1 = scmp.lt.s32.totalorder %s771_s28, %s765_s25 }
  0x19   : > { %v180_v4 = vld [vmem:[%s169_s5 + $0x40] sm:$0xff]  ;;  %694 = vmatprep.mubr.msk.f32.mxu0 %vm197_vm0, %v172_v3  ;;  %v181_v6 = vld [vmem:[%s169_s5 + $0x48] sm:$0xff]  ;;  %v182_v8 = vld [vmem:[%s169_s5 + $0x50] sm:$0xff] }
  0x1a   : > { %706 = vmatprep.mubr.msk.f32.mxu1 %vm197_vm0, %v180_v4  ;;  %695 = vmatmul.mubr.msk.f32.vlgmr.msra.gmra.mrb[0].mxu0 %vm197_vm0, %v173_v5  ;;  %v175_v9 = vld [vmem:[%s169_s5 + $0x18] sm:$0xff]  ;;  %v176_v11 = vld [vmem:[%s169_s5 + $0x20] sm:$0xff]  ;;  %v177_v13 = vld [vmem:[%s169_s5 + $0x28] sm:$0xff]  ;;  %p774_p2 = por %p773_p1, %p772_p0 }
  0x1b   : > { %707 = vmatmul.mubr.msk.f32.vlgmr.msra.gmra.mrb[0].mxu1 %vm197_vm0, %v181_v6  ;;  %697 = vmatprep.mubr.msk.f32.mxu0 %vm197_vm0, %v174_v7  ;;  %v183_v10 = vld [vmem:[%s169_s5 + $0x58] sm:$0xff]  ;;  %v184_v12 = vld [vmem:[%s169_s5 + $0x60] sm:$0xff]  ;;  %v185_v14 = vld [vmem:[%s169_s5 + $0x68] sm:$0xff] }
  0x1c   : > { %709 = vmatprep.mubr.msk.f32.mxu1 %vm197_vm0, %v182_v8  ;;  %v178_v15 = vld [vmem:[%s169_s5 + $0x30] sm:$0xff]  ;;  %v179_v17 = vld [vmem:[%s169_s5 + $0x38] sm:$0xff]  ;;  %p775_p3 = pnand %p774_p2, %p768_p13 }
  0x1d   : > { %v186_v16 = vld [vmem:[%s169_s5 + $0x70] sm:$0xff]  ;;  %v187_v18 = vld [vmem:[%s169_s5 + $0x78] sm:$0xff] }
  0x1e   : > { %698 = vmatmul.mubr.msk.f32.gmra.mrb[2].mxu0 %vm197_vm0, %v175_v9 }
  0x1f   : > { %710 = vmatmul.mubr.msk.f32.gmra.mrb[2].mxu1 %vm197_vm0, %v183_v10  ;;  %700 = vmatprep.mubr.msk.f32.mxu0 %vm197_vm0, %v176_v11 }
  0x20   : > { %712 = vmatprep.mubr.msk.f32.mxu1 %vm197_vm0, %v184_v12 }
  0x22   : > { %701 = vmatmul.mubr.msk.f32.gmra.mrb[4].mxu0 %vm197_vm0, %v177_v13 }
  0x23   : > { %713 = vmatmul.mubr.msk.f32.gmra.mrb[4].mxu1 %vm197_vm0, %v185_v14  ;;  %703 = vmatprep.mubr.msk.f32.mxu0 %vm197_vm0, %v178_v15 }
  0x24   : > { %715 = vmatprep.mubr.msk.f32.mxu1 %vm197_vm0, %v186_v16 }
  0x26   : > { %704 = vmatmul.mubr.msk.f32.gmra.mrb[6].mxu0 %vm197_vm0, %v179_v17 }
  0x27   : > { %716 = vmatmul.mubr.msk.f32.gmra.mrb[6].mxu1 %vm197_vm0, %v187_v18 }
  0xed   : > { %v696_v20 = vpop.f32.mrb[0].mxu0 }
  0xee   : > { %v708_v21 = vpop.f32.mrb[0].mxu1  ;;  %v318_v22 = vadd.f32 %v696_v20, %v570_v19  ;;  %v312_v24 = vpop.f32.mrb[1].mxu0 }
  0xef   : > { %v358_v23 = vadd.f32 %v708_v21, %v570_v19  ;;  %v352_v25 = vpop.f32.mrb[1].mxu1  ;;  %v313_v26 = vadd.f32 %v570_v19, %v312_v24 }
  0xf0   : > { %v353_v27 = vadd.f32 %v570_v19, %v352_v25  ;;  %v392_v28 = vmax.f32 %v318_v22, 0.0 }
  0xf1   : > { %v400_v29 = vmax.f32 %v358_v23, 0.0  ;;  %v391_v30 = vmax.f32 %v313_v26, 0.0  ;;  %v699_v32 = vpop.f32.mrb[2].mxu0 }
  0xf2   : > { %v399_v31 = vmax.f32 %v353_v27, 0.0  ;;  %v711_v33 = vpop.f32.mrb[2].mxu1  ;;  %v328_v34 = vadd.f32 %v699_v32, %v570_v19  ;;  %v322_v36 = vpop.f32.mrb[3].mxu0 }
  0xf3   : > { %v368_v35 = vadd.f32 %v711_v33, %v570_v19  ;;  %v362_v37 = vpop.f32.mrb[3].mxu1  ;;  %v628_v38 = vpack.c.bf16 %v392_v28, %v391_v30  ;;  %v323_v40 = vadd.f32 %v570_v19, %v322_v36 }
  0xf4   : > { %v648_v39 = vpack.c.bf16 %v400_v29, %v399_v31  ;;  %v363_v41 = vadd.f32 %v570_v19, %v362_v37  ;;  %v394_v42 = vmax.f32 %v328_v34, 0.0 }
  0xf5   : > { %v402_v43 = vmax.f32 %v368_v35, 0.0  ;;  %629 = vst [vmem:[%s932_s10] sm:$0xff] %v628_v38   ;;  %v393_v44 = vmax.f32 %v323_v40, 0.0  ;;  %v702_v46 = vpop.f32.mrb[4].mxu0 }
  0xf6   : > { %668 = vst [vmem:[%s932_s10 + $0x20] sm:$0xff] %v648_v39   ;;  %v401_v45 = vmax.f32 %v363_v41, 0.0  ;;  %v714_v47 = vpop.f32.mrb[4].mxu1  ;;  %v338_v48 = vadd.f32 %v702_v46, %v570_v19  ;;  %v332_v50 = vpop.f32.mrb[5].mxu0 }
  0xf7   : > { %v378_v49 = vadd.f32 %v714_v47, %v570_v19  ;;  %v372_v51 = vpop.f32.mrb[5].mxu1  ;;  %v633_v52 = vpack.c.bf16 %v394_v42, %v393_v44  ;;  %v333_v54 = vadd.f32 %v570_v19, %v332_v50 }
  0xf8   : > { %v653_v53 = vpack.c.bf16 %v402_v43, %v401_v45  ;;  %v373_v55 = vadd.f32 %v570_v19, %v372_v51  ;;  %v396_v56 = vmax.f32 %v338_v48, 0.0 }
  0xf9   : > { %v404_v57 = vmax.f32 %v378_v49, 0.0  ;;  %665 = vst [vmem:[%s932_s10 + $0x8] sm:$0xff] %v633_v52   ;;  %v395_v58 = vmax.f32 %v333_v54, 0.0  ;;  %v705_v60 = vpop.f32.mrb[6].mxu0 }
  0xfa   : > { %669 = vst [vmem:[%s932_s10 + $0x28] sm:$0xff] %v653_v53   ;;  %v403_v59 = vmax.f32 %v373_v55, 0.0  ;;  %v717_v61 = vpop.f32.mrb[6].mxu1  ;;  %v348_v62 = vadd.f32 %v705_v60, %v570_v19  ;;  %v342_v0 = vpop.f32.mrb[7].mxu0 }
  0xfb   : > { %v388_v63 = vadd.f32 %v717_v61, %v570_v19  ;;  %v382_v1 = vpop.f32.mrb[7].mxu1  ;;  %v638_v2 = vpack.c.bf16 %v396_v56, %v395_v58  ;;  %v343_v4 = vadd.f32 %v570_v19, %v342_v0 }
  0xfc   : > { %v658_v3 = vpack.c.bf16 %v404_v57, %v403_v59  ;;  %v383_v5 = vadd.f32 %v570_v19, %v382_v1  ;;  %v398_v6 = vmax.f32 %v348_v62, 0.0 }
  0xfd   : > { %v406_v7 = vmax.f32 %v388_v63, 0.0  ;;  %666 = vst [vmem:[%s932_s10 + $0x10] sm:$0xff] %v638_v2   ;;  %v397_v8 = vmax.f32 %v343_v4, 0.0 }
  0xfe   : > { %670 = vst [vmem:[%s932_s10 + $0x30] sm:$0xff] %v658_v3   ;;  %v405_v9 = vmax.f32 %v383_v5, 0.0 }
  0xff   : > { %v643_v10 = vpack.c.bf16 %v398_v6, %v397_v8 }
 0x100   : > { %v663_v11 = vpack.c.bf16 %v406_v7, %v405_v9 }
 0x101   : > { %667 = vst [vmem:[%s932_s10 + $0x18] sm:$0xff] %v643_v10  }
 0x102   : > { %671 = vst [vmem:[%s932_s10 + $0x38] sm:$0xff] %v663_v11  }
 0x103   : > { %778 = shalt.err (!%p775_p3)
}
 0x104   : > { %s779_s29 = scalar_lea.hbm %s945_s24, 1024  ;;  %s783_s5 = scalar_lea.hbm %s997_s3, 2048 }
 0x105   : > { %p780_p4 = scmp.ne.s32.totalorder %s945_s24, %s779_s29  ;;  %p784_p9 = scmp.lt.u32.totalorder %s945_s24, %s997_s3 }
 0x106   : > { %p785_p10 = scmp.lt.u32.totalorder %s783_s5, %s779_s29  ;;  %p787_p12 = scmp.lt.u32.totalorder %s779_s29, %s945_s24 }
 0x107   : > { %p781_p7 = pnand %p780_p4, %p890_p5 }
 0x108   : > { %p786_p11 = por %p785_p10, %p784_p9 }
 0x109   : > { %p782_p8 = pneg %p781_p7 }
 0x10a   : > { %p788_p13 = por %p787_p12, %p786_p11 }
 0x10c   : > { %p789_p0 = pnand %p788_p13, %p782_p8 }
 0x10e   : > { %792 = shalt.err (!%p789_p0)
}
 0x10f   : > { %s830_s8 = smov 64   ;;  %s831_s9 = smov 4  }
 0x110   : > { %724 = dma.vmem_to_hbm [thread:$0]  (%p890_p5), %s947_s17, 1024, %s945_s24, %s953_s16, %s830_s8, %s830_s8, %s831_s9  }
 0x111 PF: > { %p730_p1 = scmp.ge.s32.totalorder %s827_s15, 2  ;;  %s516_s10 = sand.u32 1, %s815_s12  }
 0x112   : > { %s517_s11 = scalar_lea.sflag [#allocation3], %s516_s10 }
 0x113   : > { %p727_p2 = pnand %p730_p1, %p894_p6 }
 0x115   : > { %810 = dma.done.wait (!%p727_p2), %s517_s11, 1024  }
 0x116   : > { %812 = vsyncadd (!%p727_p2), %s517_s11, 4294966272  ;;  %p13_p3 = scmp.ge.s32.totalorder %s877_s18, 4   ;;  %s1000_s12 = smov %s819_s13 }
 0x117   : > { %s1001_s13 = smov %s823_s14  ;;  %s1002_s14 = smov %s888_s21 }
 0x118   : > { %s1003_s15 = smov %s877_s18  ;;  %15 = sbr.rel (!%p13_p3) target bundleno = 3 (0x3), region = 67 }
 0x11f   :  { %522 = vsyncpa [#allocation3], 1 }
 0x120   :  { %524 = vsyncpa [#allocation3 + $0x1], 1 }

</bundles_post_ra>
